<compile_context>
chip_gen: v7x
topology: tpu7x:2x2x1
jax: 0.10.0
libtpu: 0.0.40
codegen_flags: <defaults>
</compile_context>

<pallas_src>
import jax
import jax.numpy as jnp
from jax import lax
from jax.experimental import pallas as pl
from jax.experimental.pallas import tpu as pltpu


def _round_up(n, m):
    return ((n + m - 1) // m) * m


def _pool_out_size(h):
    # MaxPool2d(kernel=(3,1), stride=2) applied after padding2 (height h+1).
    return (h - 2) // 2 + 1


def _make_dpcnn_kernel(L, D, C, SG, Bt):
    H0 = L - 2          # height after conv_region
    N = Bt * SG         # rows handled per grid step

    def kernel(ridx_ref, emb_ref, wr_ref, br_ref, wc_ref, bc_ref,
               wf_ref, bf_ref, out_ref):
        # ---- hoisted loads (read once, reused through the unrolled pyramid) --
        ridx = ridx_ref[...]          # (N, 1) int32: row index within example
        emb = emb_ref[...]            # (N, D)  flattened (Bt, SG, D)
        wrf = wr_ref[...]             # (3*D, C) fused conv_region weights
        br = br_ref[...]              # (1, C)
        wcf = wc_ref[...]             # (3*C, C) fused conv weights
        bc = bc_ref[...]              # (1, C)
        wfc = wf_ref[...]             # (C, D)
        bf = bf_ref[...]              # (1, D)

        # ---- register-level row shifts (per-example semantics hold because
        #      every example occupies a full SG-row slab and invalid rows are
        #      masked to zero after every conv) ---------------------------------
        def up(x, k):                 # result[i] = x[i + k]
            if k == 0:
                return x
            return pltpu.roll(x, (N - k) % N, 0)

        def down1(x):                 # result[i] = x[i - 1], top-pad row = 0
            return jnp.where(ridx == 0, 0.0, pltpu.roll(x, 1, 0))

        def mask_rows(y, h):          # zero rows >= h of every example's slab
            return jnp.where(ridx < h, y, 0.0)

        def conv3(xin, w, b):
            # fused 3-tap conv: lane-concat of xin and its two up-shifts,
            # then one MXU matmul against the pre-fused (3*K, C) weights.
            lhs = jnp.concatenate([xin, up(xin, 1), up(xin, 2)], axis=1)
            return jnp.dot(lhs, w, preferred_element_type=jnp.float32) + b

        def relu_conv(x_act, h):
            # padding1 (one zero row on top; the bottom zero row is already
            # present because rows >= h are masked to zero) -> relu -> conv.
            xr = jnp.maximum(down1(x_act), 0.0)
            return mask_rows(conv3(xr, wcf, bc), h)

        # ---------- conv_region: Conv2d(1, C, (3, D)) -------------------------
        x = mask_rows(conv3(emb, wrf, br), H0)

        # ---------- two pad -> relu -> conv stages ----------------------------
        x = relu_conv(x, H0)
        x = relu_conv(x, H0)

        # ---------- repeated _block down-sampling (statically unrolled) -------
        h = H0
        while h >= 2:
            ho = _pool_out_size(h)
            # padding2 + MaxPool2d((3,1), stride=2): rows >= h are already the
            # zero pad; rolling-window max, then a stride-2 row compaction done
            # with per-row selects (all register-level, no VMEM stores).
            m = jnp.maximum(jnp.maximum(x, up(x, 1)), up(x, 2))
            px = jnp.zeros_like(x)
            for j in range(ho):
                px = jnp.where(ridx == j, up(m, j), px)
            y = relu_conv(px, ho)
            y = relu_conv(y, ho)
            x = y + px                # residual
            h = ho

        # h == 1: row 0 of each example's slab holds the final activation.
        # fc: Linear(C, D) applied to the whole slab (extra rows are zero and
        # ignored by the wrapper) -> one dense (N, D) store.
        out_ref[...] = jnp.dot(x, wfc, preferred_element_type=jnp.float32) + bf

    return kernel


def dpcnn_forward(tokens, params, block_batch=None):
    B, L = tokens.shape
    _, D = params['emb'].shape
    C = params['wc'].shape[1]

    SG = _round_up(L, 8)                       # per-example slab height (>= H0+2)
    if block_batch is None:
        block_batch = max(1, min(B, max(1, 256 // SG)))   # target M ~ 128-256
    Bt = block_batch
    Bp = pl.cdiv(B, Bt) * Bt                   # padded batch
    N = Bt * SG

    # Embedding gather + layout prep (glue, plain JAX).
    emb = params['emb'][tokens].astype(jnp.float32)          # (B, L, D)
    embp = jnp.zeros((Bp, SG, D), jnp.float32).at[:B, :L, :].set(emb)
    emb_flat = embp.reshape(Bp * SG, D)                      # (Bp*SG, D)
    ridx = jnp.tile(jnp.arange(SG, dtype=jnp.int32), Bp).reshape(Bp * SG, 1)

    wrf = params['wr'].reshape(3 * D, C).astype(jnp.float32)  # fused region W
    wcf = params['wc'].reshape(3 * C, C).astype(jnp.float32)  # fused conv W

    kernel = _make_dpcnn_kernel(L, D, C, SG, Bt)
    out = pl.pallas_call(
        kernel,
        out_shape=jax.ShapeDtypeStruct((Bp * SG, D), jnp.float32),
        grid_spec=pltpu.PrefetchScalarGridSpec(
            num_scalar_prefetch=0,
            grid=(Bp // Bt,),
            in_specs=[
                pl.BlockSpec((N, 1), lambda b: (b, 0)),        # row-in-example idx
                pl.BlockSpec((N, D), lambda b: (b, 0)),        # embedded tokens
                pl.BlockSpec((3 * D, C), lambda b: (0, 0)),    # conv_region W (fused)
                pl.BlockSpec((1, C), lambda b: (0, 0)),        # conv_region b
                pl.BlockSpec((3 * C, C), lambda b: (0, 0)),    # conv W (fused)
                pl.BlockSpec((1, C), lambda b: (0, 0)),        # conv b
                pl.BlockSpec((C, D), lambda b: (0, 0)),        # fc W (C, D)
                pl.BlockSpec((1, D), lambda b: (0, 0)),        # fc b
            ],
            out_specs=pl.BlockSpec((N, D), lambda b: (b, 0)),  # dense output slab
        ),
        compiler_params=pltpu.CompilerParams(
            dimension_semantics=("parallel",)),
    )(ridx, emb_flat, wrf, params['br'], wcf, params['bc'],
      params['wf'], params['bf'])

    # Row 0 of each example's slab is the logits row.
    return out.reshape(Bp, SG, D)[:B, 0, :]


# ----------------------------- pure-JAX reference ----------------------------
def dpcnn_reference(tokens, params):
    B = tokens.shape[0]
    x = params['emb'][tokens][:, None, :, :]                              # NCHW (B,1,L,D)
    w_region = jnp.transpose(params['wr'], (2, 0, 1))[:, None, :, :]      # (C,1,3,D)
    w_conv = jnp.transpose(params['wc'], (2, 1, 0))[:, :, :, None]        # (C,C,3,1)
    dn = ('NCHW', 'OIHW', 'NCHW')

    def conv(t, w, b):
        y = lax.conv_general_dilated(t, w, (1, 1), 'VALID', dimension_numbers=dn)
        return y + b.reshape(1, -1, 1, 1)

    pad1 = lambda t: jnp.pad(t, ((0, 0), (0, 0), (1, 1), (0, 0)))
    pad2 = lambda t: jnp.pad(t, ((0, 0), (0, 0), (0, 1), (0, 0)))
    relu = lambda t: jnp.maximum(t, 0.0)
    maxpool = lambda t: lax.reduce_window(t, -jnp.inf, lax.max,
                                          (1, 1, 3, 1), (1, 1, 2, 1), 'VALID')

    x = conv(x, w_region, params['br'][0])
    x = conv(relu(pad1(x)), w_conv, params['bc'][0])
    x = conv(relu(pad1(x)), w_conv, params['bc'][0])
    while x.shape[2] >= 2:
        px = maxpool(pad2(x))
        x = conv(relu(pad1(px)), w_conv, params['bc'][0])
        x = conv(relu(pad1(x)), w_conv, params['bc'][0])
        x = x + px
    x = x.reshape(B, -1)
    return x @ params['wf'] + params['bf'][0]


def init_params(key, vocab, D, C):
    ks = jax.random.split(key, 7)
    s = 0.1
    return {
        'emb': jax.random.normal(ks[0], (vocab, D), jnp.float32) * s,
        'wr': jax.random.normal(ks[1], (3, D, C), jnp.float32) * s,
        'br': jax.random.normal(ks[2], (1, C), jnp.float32) * s,
        'wc': jax.random.normal(ks[3], (3, C, C), jnp.float32) * s,
        'bc': jax.random.normal(ks[4], (1, C), jnp.float32) * s,
        'wf': jax.random.normal(ks[5], (C, D), jnp.float32) * s,
        'bf': jax.random.normal(ks[6], (1, D), jnp.float32) * s,
    }


if __name__ == "__main__":
    # args.nhid = 32, args.num_filters = 16, vocab = 258, batch = 2, seq = 8
    B, L, D, C, VOCAB = 2, 8, 32, 16, 258
    key = jax.random.PRNGKey(0)
    kp, kt = jax.random.split(key)
    params = init_params(kp, VOCAB, D, C)
    tokens = jax.random.randint(kt, (B, L), 0, VOCAB, dtype=jnp.int32)

    out = jax.block_until_ready(dpcnn_forward(tokens, params))
    ref = dpcnn_reference(tokens, params)

    assert out.shape == (B, D), out.shape
    assert jnp.allclose(out, ref, atol=1e-4, rtol=1e-4), (out, ref)
    print("KERNEL_OK")
</pallas_src>

<mosaic_0001>
module attributes {stable_mosaic.version = 11 : i64} {
  func.func @kernel(%arg0: i32, %arg1: memref<16x1xi32, #tpu.memory_space<vmem>>, %arg2: memref<16x32xf32, #tpu.memory_space<vmem>>, %arg3: memref<96x16xf32, #tpu.memory_space<vmem>>, %arg4: memref<1x16xf32, #tpu.memory_space<vmem>>, %arg5: memref<48x16xf32, #tpu.memory_space<vmem>>, %arg6: memref<1x16xf32, #tpu.memory_space<vmem>>, %arg7: memref<16x32xf32, #tpu.memory_space<vmem>>, %arg8: memref<1x32xf32, #tpu.memory_space<vmem>>, %arg9: memref<16x32xf32, #tpu.memory_space<vmem>>) attributes {dimension_semantics = [#tpu.dimension_semantics<parallel>], iteration_bounds = array<i64: 1>, scalar_prefetch = 0 : i64, scratch_operands = 0 : i64, tpu.core_type = #tpu.core_type<tc>, window_params = [{transform_indices = @transform_0, window_bounds = array<i64: 16, 1>}, {transform_indices = @transform_1, window_bounds = array<i64: 16, 32>}, {pipeline_mode = #tpu.pipeline_mode<synchronous>, transform_indices = @transform_2, window_bounds = array<i64: 96, 16>}, {pipeline_mode = #tpu.pipeline_mode<synchronous>, transform_indices = @transform_3, window_bounds = array<i64: 1, 16>}, {pipeline_mode = #tpu.pipeline_mode<synchronous>, transform_indices = @transform_4, window_bounds = array<i64: 48, 16>}, {pipeline_mode = #tpu.pipeline_mode<synchronous>, transform_indices = @transform_5, window_bounds = array<i64: 1, 16>}, {pipeline_mode = #tpu.pipeline_mode<synchronous>, transform_indices = @transform_6, window_bounds = array<i64: 16, 32>}, {pipeline_mode = #tpu.pipeline_mode<synchronous>, transform_indices = @transform_7, window_bounds = array<i64: 1, 32>}, {transform_indices = @transform_8, window_bounds = array<i64: 16, 32>}]} {
    %c0 = arith.constant 0 : index
    %c0_0 = arith.constant 0 : index
    %0 = vector.load %arg1[%c0, %c0_0] : memref<16x1xi32, #tpu.memory_space<vmem>>, vector<16x1xi32>
    %c0_1 = arith.constant 0 : index
    %c0_2 = arith.constant 0 : index
    %1 = vector.load %arg2[%c0_1, %c0_2] : memref<16x32xf32, #tpu.memory_space<vmem>>, vector<16x32xf32>
    %c0_3 = arith.constant 0 : index
    %c0_4 = arith.constant 0 : index
    %2 = vector.load %arg3[%c0_3, %c0_4] : memref<96x16xf32, #tpu.memory_space<vmem>>, vector<96x16xf32>
    %c0_5 = arith.constant 0 : index
    %c0_6 = arith.constant 0 : index
    %3 = vector.load %arg4[%c0_5, %c0_6] : memref<1x16xf32, #tpu.memory_space<vmem>>, vector<1x16xf32>
    %c0_7 = arith.constant 0 : index
    %c0_8 = arith.constant 0 : index
    %4 = vector.load %arg5[%c0_7, %c0_8] : memref<48x16xf32, #tpu.memory_space<vmem>>, vector<48x16xf32>
    %c0_9 = arith.constant 0 : index
    %c0_10 = arith.constant 0 : index
    %5 = vector.load %arg6[%c0_9, %c0_10] : memref<1x16xf32, #tpu.memory_space<vmem>>, vector<1x16xf32>
    %c0_11 = arith.constant 0 : index
    %c0_12 = arith.constant 0 : index
    %6 = vector.load %arg7[%c0_11, %c0_12] : memref<16x32xf32, #tpu.memory_space<vmem>>, vector<16x32xf32>
    %c0_13 = arith.constant 0 : index
    %c0_14 = arith.constant 0 : index
    %7 = vector.load %arg8[%c0_13, %c0_14] : memref<1x32xf32, #tpu.memory_space<vmem>>, vector<1x32xf32>
    %c15_i32 = arith.constant 15 : i32
    %8 = tpu.dynamic_rotate %1 by %c15_i32 dim 0 : vector<16x32xf32>, i32 -> vector<16x32xf32>
    %c14_i32 = arith.constant 14 : i32
    %9 = tpu.dynamic_rotate %1 by %c14_i32 dim 0 : vector<16x32xf32>, i32 -> vector<16x32xf32>
    %10 = tpu.concatenate %1, %8, %9 in 1 : vector<16x32xf32>, vector<16x32xf32>, vector<16x32xf32> -> vector<16x96xf32>
    %cst = arith.constant dense<0.000000e+00> : vector<16x16xf32>
    %11 = tpu.matmul %10, %2, %cst {dimension_numbers = #tpu.dot_dimension_numbers<[1], [0], [0], [1], [0, 0, 1, 1], [], []>} : vector<16x96xf32>, vector<96x16xf32>, vector<16x16xf32> -> vector<16x16xf32>
    %12 = vector.broadcast %3 : vector<1x16xf32> to vector<16x16xf32>
    %13 = arith.addf %11, %12 : vector<16x16xf32>
    %c6_i32 = arith.constant 6 : i32
    %14 = vector.broadcast %c6_i32 : i32 to vector<16x1xi32>
    %15 = arith.cmpi slt, %0, %14 : vector<16x1xi32>
    %cst_15 = arith.constant 0.000000e+00 : f32
    %16 = vector.shape_cast %15 : vector<16x1xi1> to vector<16x1xi1>
    %17 = vector.broadcast %16 : vector<16x1xi1> to vector<16x16xi1>
    %18 = vector.broadcast %cst_15 : f32 to vector<16x16xf32>
    %19 = arith.select %17, %13, %18 : vector<16x16xi1>, vector<16x16xf32>
    %c0_i32 = arith.constant 0 : i32
    %20 = vector.broadcast %c0_i32 : i32 to vector<16x1xi32>
    %21 = arith.cmpi eq, %0, %20 : vector<16x1xi32>
    %c1_i32 = arith.constant 1 : i32
    %22 = tpu.dynamic_rotate %19 by %c1_i32 dim 0 : vector<16x16xf32>, i32 -> vector<16x16xf32>
    %cst_16 = arith.constant 0.000000e+00 : f32
    %23 = vector.shape_cast %21 : vector<16x1xi1> to vector<16x1xi1>
    %24 = vector.broadcast %23 : vector<16x1xi1> to vector<16x16xi1>
    %25 = vector.broadcast %cst_16 : f32 to vector<16x16xf32>
    %26 = arith.select %24, %25, %22 : vector<16x16xi1>, vector<16x16xf32>
    %cst_17 = arith.constant 0.000000e+00 : f32
    %27 = vector.broadcast %cst_17 : f32 to vector<16x16xf32>
    %28 = arith.maximumf %26, %27 : vector<16x16xf32>
    %c15_i32_18 = arith.constant 15 : i32
    %29 = tpu.dynamic_rotate %28 by %c15_i32_18 dim 0 : vector<16x16xf32>, i32 -> vector<16x16xf32>
    %c14_i32_19 = arith.constant 14 : i32
    %30 = tpu.dynamic_rotate %28 by %c14_i32_19 dim 0 : vector<16x16xf32>, i32 -> vector<16x16xf32>
    %31 = tpu.concatenate %28, %29, %30 in 1 : vector<16x16xf32>, vector<16x16xf32>, vector<16x16xf32> -> vector<16x48xf32>
    %cst_20 = arith.constant dense<0.000000e+00> : vector<16x16xf32>
    %32 = tpu.matmul %31, %4, %cst_20 {dimension_numbers = #tpu.dot_dimension_numbers<[1], [0], [0], [1], [0, 0, 1, 1], [], []>} : vector<16x48xf32>, vector<48x16xf32>, vector<16x16xf32> -> vector<16x16xf32>
    %33 = vector.broadcast %5 : vector<1x16xf32> to vector<16x16xf32>
    %34 = arith.addf %32, %33 : vector<16x16xf32>
    %c6_i32_21 = arith.constant 6 : i32
    %35 = vector.broadcast %c6_i32_21 : i32 to vector<16x1xi32>
    %36 = arith.cmpi slt, %0, %35 : vector<16x1xi32>
    %cst_22 = arith.constant 0.000000e+00 : f32
    %37 = vector.shape_cast %36 : vector<16x1xi1> to vector<16x1xi1>
    %38 = vector.broadcast %37 : vector<16x1xi1> to vector<16x16xi1>
    %39 = vector.broadcast %cst_22 : f32 to vector<16x16xf32>
    %40 = arith.select %38, %34, %39 : vector<16x16xi1>, vector<16x16xf32>
    %c0_i32_23 = arith.constant 0 : i32
    %41 = vector.broadcast %c0_i32_23 : i32 to vector<16x1xi32>
    %42 = arith.cmpi eq, %0, %41 : vector<16x1xi32>
    %c1_i32_24 = arith.constant 1 : i32
    %43 = tpu.dynamic_rotate %40 by %c1_i32_24 dim 0 : vector<16x16xf32>, i32 -> vector<16x16xf32>
    %cst_25 = arith.constant 0.000000e+00 : f32
    %44 = vector.shape_cast %42 : vector<16x1xi1> to vector<16x1xi1>
    %45 = vector.broadcast %44 : vector<16x1xi1> to vector<16x16xi1>
    %46 = vector.broadcast %cst_25 : f32 to vector<16x16xf32>
    %47 = arith.select %45, %46, %43 : vector<16x16xi1>, vector<16x16xf32>
    %cst_26 = arith.constant 0.000000e+00 : f32
    %48 = vector.broadcast %cst_26 : f32 to vector<16x16xf32>
    %49 = arith.maximumf %47, %48 : vector<16x16xf32>
    %c15_i32_27 = arith.constant 15 : i32
    %50 = tpu.dynamic_rotate %49 by %c15_i32_27 dim 0 : vector<16x16xf32>, i32 -> vector<16x16xf32>
    %c14_i32_28 = arith.constant 14 : i32
    %51 = tpu.dynamic_rotate %49 by %c14_i32_28 dim 0 : vector<16x16xf32>, i32 -> vector<16x16xf32>
    %52 = tpu.concatenate %49, %50, %51 in 1 : vector<16x16xf32>, vector<16x16xf32>, vector<16x16xf32> -> vector<16x48xf32>
    %cst_29 = arith.constant dense<0.000000e+00> : vector<16x16xf32>
    %53 = tpu.matmul %52, %4, %cst_29 {dimension_numbers = #tpu.dot_dimension_numbers<[1], [0], [0], [1], [0, 0, 1, 1], [], []>} : vector<16x48xf32>, vector<48x16xf32>, vector<16x16xf32> -> vector<16x16xf32>
    %54 = vector.broadcast %5 : vector<1x16xf32> to vector<16x16xf32>
    %55 = arith.addf %53, %54 : vector<16x16xf32>
    %c6_i32_30 = arith.constant 6 : i32
    %56 = vector.broadcast %c6_i32_30 : i32 to vector<16x1xi32>
    %57 = arith.cmpi slt, %0, %56 : vector<16x1xi32>
    %cst_31 = arith.constant 0.000000e+00 : f32
    %58 = vector.shape_cast %57 : vector<16x1xi1> to vector<16x1xi1>
    %59 = vector.broadcast %58 : vector<16x1xi1> to vector<16x16xi1>
    %60 = vector.broadcast %cst_31 : f32 to vector<16x16xf32>
    %61 = arith.select %59, %55, %60 : vector<16x16xi1>, vector<16x16xf32>
    %c15_i32_32 = arith.constant 15 : i32
    %62 = tpu.dynamic_rotate %61 by %c15_i32_32 dim 0 : vector<16x16xf32>, i32 -> vector<16x16xf32>
    %63 = arith.maximumf %61, %62 : vector<16x16xf32>
    %c14_i32_33 = arith.constant 14 : i32
    %64 = tpu.dynamic_rotate %61 by %c14_i32_33 dim 0 : vector<16x16xf32>, i32 -> vector<16x16xf32>
    %65 = arith.maximumf %63, %64 : vector<16x16xf32>
    %cst_34 = arith.constant 0.000000e+00 : f32
    %66 = vector.broadcast %cst_34 : f32 to vector<16x16xf32>
    %c0_i32_35 = arith.constant 0 : i32
    %67 = vector.broadcast %c0_i32_35 : i32 to vector<16x1xi32>
    %68 = arith.cmpi eq, %0, %67 : vector<16x1xi32>
    %69 = vector.shape_cast %68 : vector<16x1xi1> to vector<16x1xi1>
    %70 = vector.broadcast %69 : vector<16x1xi1> to vector<16x16xi1>
    %71 = arith.select %70, %65, %66 : vector<16x16xi1>, vector<16x16xf32>
    %c1_i32_36 = arith.constant 1 : i32
    %72 = vector.broadcast %c1_i32_36 : i32 to vector<16x1xi32>
    %73 = arith.cmpi eq, %0, %72 : vector<16x1xi32>
    %c15_i32_37 = arith.constant 15 : i32
    %74 = tpu.dynamic_rotate %65 by %c15_i32_37 dim 0 : vector<16x16xf32>, i32 -> vector<16x16xf32>
    %75 = vector.shape_cast %73 : vector<16x1xi1> to vector<16x1xi1>
    %76 = vector.broadcast %75 : vector<16x1xi1> to vector<16x16xi1>
    %77 = arith.select %76, %74, %71 : vector<16x16xi1>, vector<16x16xf32>
    %c2_i32 = arith.constant 2 : i32
    %78 = vector.broadcast %c2_i32 : i32 to vector<16x1xi32>
    %79 = arith.cmpi eq, %0, %78 : vector<16x1xi32>
    %c14_i32_38 = arith.constant 14 : i32
    %80 = tpu.dynamic_rotate %65 by %c14_i32_38 dim 0 : vector<16x16xf32>, i32 -> vector<16x16xf32>
    %81 = vector.shape_cast %79 : vector<16x1xi1> to vector<16x1xi1>
    %82 = vector.broadcast %81 : vector<16x1xi1> to vector<16x16xi1>
    %83 = arith.select %82, %80, %77 : vector<16x16xi1>, vector<16x16xf32>
    %c0_i32_39 = arith.constant 0 : i32
    %84 = vector.broadcast %c0_i32_39 : i32 to vector<16x1xi32>
    %85 = arith.cmpi eq, %0, %84 : vector<16x1xi32>
    %c1_i32_40 = arith.constant 1 : i32
    %86 = tpu.dynamic_rotate %83 by %c1_i32_40 dim 0 : vector<16x16xf32>, i32 -> vector<16x16xf32>
    %cst_41 = arith.constant 0.000000e+00 : f32
    %87 = vector.shape_cast %85 : vector<16x1xi1> to vector<16x1xi1>
    %88 = vector.broadcast %87 : vector<16x1xi1> to vector<16x16xi1>
    %89 = vector.broadcast %cst_41 : f32 to vector<16x16xf32>
    %90 = arith.select %88, %89, %86 : vector<16x16xi1>, vector<16x16xf32>
    %cst_42 = arith.constant 0.000000e+00 : f32
    %91 = vector.broadcast %cst_42 : f32 to vector<16x16xf32>
    %92 = arith.maximumf %90, %91 : vector<16x16xf32>
    %c15_i32_43 = arith.constant 15 : i32
    %93 = tpu.dynamic_rotate %92 by %c15_i32_43 dim 0 : vector<16x16xf32>, i32 -> vector<16x16xf32>
    %c14_i32_44 = arith.constant 14 : i32
    %94 = tpu.dynamic_rotate %92 by %c14_i32_44 dim 0 : vector<16x16xf32>, i32 -> vector<16x16xf32>
    %95 = tpu.concatenate %92, %93, %94 in 1 : vector<16x16xf32>, vector<16x16xf32>, vector<16x16xf32> -> vector<16x48xf32>
    %cst_45 = arith.constant dense<0.000000e+00> : vector<16x16xf32>
    %96 = tpu.matmul %95, %4, %cst_45 {dimension_numbers = #tpu.dot_dimension_numbers<[1], [0], [0], [1], [0, 0, 1, 1], [], []>} : vector<16x48xf32>, vector<48x16xf32>, vector<16x16xf32> -> vector<16x16xf32>
    %97 = vector.broadcast %5 : vector<1x16xf32> to vector<16x16xf32>
    %98 = arith.addf %96, %97 : vector<16x16xf32>
    %c3_i32 = arith.constant 3 : i32
    %99 = vector.broadcast %c3_i32 : i32 to vector<16x1xi32>
    %100 = arith.cmpi slt, %0, %99 : vector<16x1xi32>
    %cst_46 = arith.constant 0.000000e+00 : f32
    %101 = vector.shape_cast %100 : vector<16x1xi1> to vector<16x1xi1>
    %102 = vector.broadcast %101 : vector<16x1xi1> to vector<16x16xi1>
    %103 = vector.broadcast %cst_46 : f32 to vector<16x16xf32>
    %104 = arith.select %102, %98, %103 : vector<16x16xi1>, vector<16x16xf32>
    %c0_i32_47 = arith.constant 0 : i32
    %105 = vector.broadcast %c0_i32_47 : i32 to vector<16x1xi32>
    %106 = arith.cmpi eq, %0, %105 : vector<16x1xi32>
    %c1_i32_48 = arith.constant 1 : i32
    %107 = tpu.dynamic_rotate %104 by %c1_i32_48 dim 0 : vector<16x16xf32>, i32 -> vector<16x16xf32>
    %cst_49 = arith.constant 0.000000e+00 : f32
    %108 = vector.shape_cast %106 : vector<16x1xi1> to vector<16x1xi1>
    %109 = vector.broadcast %108 : vector<16x1xi1> to vector<16x16xi1>
    %110 = vector.broadcast %cst_49 : f32 to vector<16x16xf32>
    %111 = arith.select %109, %110, %107 : vector<16x16xi1>, vector<16x16xf32>
    %cst_50 = arith.constant 0.000000e+00 : f32
    %112 = vector.broadcast %cst_50 : f32 to vector<16x16xf32>
    %113 = arith.maximumf %111, %112 : vector<16x16xf32>
    %c15_i32_51 = arith.constant 15 : i32
    %114 = tpu.dynamic_rotate %113 by %c15_i32_51 dim 0 : vector<16x16xf32>, i32 -> vector<16x16xf32>
    %c14_i32_52 = arith.constant 14 : i32
    %115 = tpu.dynamic_rotate %113 by %c14_i32_52 dim 0 : vector<16x16xf32>, i32 -> vector<16x16xf32>
    %116 = tpu.concatenate %113, %114, %115 in 1 : vector<16x16xf32>, vector<16x16xf32>, vector<16x16xf32> -> vector<16x48xf32>
    %cst_53 = arith.constant dense<0.000000e+00> : vector<16x16xf32>
    %117 = tpu.matmul %116, %4, %cst_53 {dimension_numbers = #tpu.dot_dimension_numbers<[1], [0], [0], [1], [0, 0, 1, 1], [], []>} : vector<16x48xf32>, vector<48x16xf32>, vector<16x16xf32> -> vector<16x16xf32>
    %118 = vector.broadcast %5 : vector<1x16xf32> to vector<16x16xf32>
    %119 = arith.addf %117, %118 : vector<16x16xf32>
    %c3_i32_54 = arith.constant 3 : i32
    %120 = vector.broadcast %c3_i32_54 : i32 to vector<16x1xi32>
    %121 = arith.cmpi slt, %0, %120 : vector<16x1xi32>
    %cst_55 = arith.constant 0.000000e+00 : f32
    %122 = vector.shape_cast %121 : vector<16x1xi1> to vector<16x1xi1>
    %123 = vector.broadcast %122 : vector<16x1xi1> to vector<16x16xi1>
    %124 = vector.broadcast %cst_55 : f32 to vector<16x16xf32>
    %125 = arith.select %123, %119, %124 : vector<16x16xi1>, vector<16x16xf32>
    %126 = arith.addf %125, %83 : vector<16x16xf32>
    %c15_i32_56 = arith.constant 15 : i32
    %127 = tpu.dynamic_rotate %126 by %c15_i32_56 dim 0 : vector<16x16xf32>, i32 -> vector<16x16xf32>
    %128 = arith.maximumf %126, %127 : vector<16x16xf32>
    %c14_i32_57 = arith.constant 14 : i32
    %129 = tpu.dynamic_rotate %126 by %c14_i32_57 dim 0 : vector<16x16xf32>, i32 -> vector<16x16xf32>
    %130 = arith.maximumf %128, %129 : vector<16x16xf32>
    %cst_58 = arith.constant 0.000000e+00 : f32
    %131 = vector.broadcast %cst_58 : f32 to vector<16x16xf32>
    %c0_i32_59 = arith.constant 0 : i32
    %132 = vector.broadcast %c0_i32_59 : i32 to vector<16x1xi32>
    %133 = arith.cmpi eq, %0, %132 : vector<16x1xi32>
    %134 = vector.shape_cast %133 : vector<16x1xi1> to vector<16x1xi1>
    %135 = vector.broadcast %134 : vector<16x1xi1> to vector<16x16xi1>
    %136 = arith.select %135, %130, %131 : vector<16x16xi1>, vector<16x16xf32>
    %c0_i32_60 = arith.constant 0 : i32
    %137 = vector.broadcast %c0_i32_60 : i32 to vector<16x1xi32>
    %138 = arith.cmpi eq, %0, %137 : vector<16x1xi32>
    %c1_i32_61 = arith.constant 1 : i32
    %139 = tpu.dynamic_rotate %136 by %c1_i32_61 dim 0 : vector<16x16xf32>, i32 -> vector<16x16xf32>
    %cst_62 = arith.constant 0.000000e+00 : f32
    %140 = vector.shape_cast %138 : vector<16x1xi1> to vector<16x1xi1>
    %141 = vector.broadcast %140 : vector<16x1xi1> to vector<16x16xi1>
    %142 = vector.broadcast %cst_62 : f32 to vector<16x16xf32>
    %143 = arith.select %141, %142, %139 : vector<16x16xi1>, vector<16x16xf32>
    %cst_63 = arith.constant 0.000000e+00 : f32
    %144 = vector.broadcast %cst_63 : f32 to vector<16x16xf32>
    %145 = arith.maximumf %143, %144 : vector<16x16xf32>
    %c15_i32_64 = arith.constant 15 : i32
    %146 = tpu.dynamic_rotate %145 by %c15_i32_64 dim 0 : vector<16x16xf32>, i32 -> vector<16x16xf32>
    %c14_i32_65 = arith.constant 14 : i32
    %147 = tpu.dynamic_rotate %145 by %c14_i32_65 dim 0 : vector<16x16xf32>, i32 -> vector<16x16xf32>
    %148 = tpu.concatenate %145, %146, %147 in 1 : vector<16x16xf32>, vector<16x16xf32>, vector<16x16xf32> -> vector<16x48xf32>
    %cst_66 = arith.constant dense<0.000000e+00> : vector<16x16xf32>
    %149 = tpu.matmul %148, %4, %cst_66 {dimension_numbers = #tpu.dot_dimension_numbers<[1], [0], [0], [1], [0, 0, 1, 1], [], []>} : vector<16x48xf32>, vector<48x16xf32>, vector<16x16xf32> -> vector<16x16xf32>
    %150 = vector.broadcast %5 : vector<1x16xf32> to vector<16x16xf32>
    %151 = arith.addf %149, %150 : vector<16x16xf32>
    %c1_i32_67 = arith.constant 1 : i32
    %152 = vector.broadcast %c1_i32_67 : i32 to vector<16x1xi32>
    %153 = arith.cmpi slt, %0, %152 : vector<16x1xi32>
    %cst_68 = arith.constant 0.000000e+00 : f32
    %154 = vector.shape_cast %153 : vector<16x1xi1> to vector<16x1xi1>
    %155 = vector.broadcast %154 : vector<16x1xi1> to vector<16x16xi1>
    %156 = vector.broadcast %cst_68 : f32 to vector<16x16xf32>
    %157 = arith.select %155, %151, %156 : vector<16x16xi1>, vector<16x16xf32>
    %c0_i32_69 = arith.constant 0 : i32
    %158 = vector.broadcast %c0_i32_69 : i32 to vector<16x1xi32>
    %159 = arith.cmpi eq, %0, %158 : vector<16x1xi32>
    %c1_i32_70 = arith.constant 1 : i32
    %160 = tpu.dynamic_rotate %157 by %c1_i32_70 dim 0 : vector<16x16xf32>, i32 -> vector<16x16xf32>
    %cst_71 = arith.constant 0.000000e+00 : f32
    %161 = vector.shape_cast %159 : vector<16x1xi1> to vector<16x1xi1>
    %162 = vector.broadcast %161 : vector<16x1xi1> to vector<16x16xi1>
    %163 = vector.broadcast %cst_71 : f32 to vector<16x16xf32>
    %164 = arith.select %162, %163, %160 : vector<16x16xi1>, vector<16x16xf32>
    %cst_72 = arith.constant 0.000000e+00 : f32
    %165 = vector.broadcast %cst_72 : f32 to vector<16x16xf32>
    %166 = arith.maximumf %164, %165 : vector<16x16xf32>
    %c15_i32_73 = arith.constant 15 : i32
    %167 = tpu.dynamic_rotate %166 by %c15_i32_73 dim 0 : vector<16x16xf32>, i32 -> vector<16x16xf32>
    %c14_i32_74 = arith.constant 14 : i32
    %168 = tpu.dynamic_rotate %166 by %c14_i32_74 dim 0 : vector<16x16xf32>, i32 -> vector<16x16xf32>
    %169 = tpu.concatenate %166, %167, %168 in 1 : vector<16x16xf32>, vector<16x16xf32>, vector<16x16xf32> -> vector<16x48xf32>
    %cst_75 = arith.constant dense<0.000000e+00> : vector<16x16xf32>
    %170 = tpu.matmul %169, %4, %cst_75 {dimension_numbers = #tpu.dot_dimension_numbers<[1], [0], [0], [1], [0, 0, 1, 1], [], []>} : vector<16x48xf32>, vector<48x16xf32>, vector<16x16xf32> -> vector<16x16xf32>
    %171 = vector.broadcast %5 : vector<1x16xf32> to vector<16x16xf32>
    %172 = arith.addf %170, %171 : vector<16x16xf32>
    %c1_i32_76 = arith.constant 1 : i32
    %173 = vector.broadcast %c1_i32_76 : i32 to vector<16x1xi32>
    %174 = arith.cmpi slt, %0, %173 : vector<16x1xi32>
    %cst_77 = arith.constant 0.000000e+00 : f32
    %175 = vector.shape_cast %174 : vector<16x1xi1> to vector<16x1xi1>
    %176 = vector.broadcast %175 : vector<16x1xi1> to vector<16x16xi1>
    %177 = vector.broadcast %cst_77 : f32 to vector<16x16xf32>
    %178 = arith.select %176, %172, %177 : vector<16x16xi1>, vector<16x16xf32>
    %179 = arith.addf %178, %136 : vector<16x16xf32>
    %cst_78 = arith.constant dense<0.000000e+00> : vector<16x32xf32>
    %180 = tpu.matmul %179, %6, %cst_78 {dimension_numbers = #tpu.dot_dimension_numbers<[1], [0], [0], [1], [0, 0, 1, 1], [], []>} : vector<16x16xf32>, vector<16x32xf32>, vector<16x32xf32> -> vector<16x32xf32>
    %181 = vector.broadcast %7 : vector<1x32xf32> to vector<16x32xf32>
    %182 = arith.addf %180, %181 : vector<16x32xf32>
    %c0_79 = arith.constant 0 : index
    %c0_80 = arith.constant 0 : index
    %183 = vector.load %arg9[%c0_79, %c0_80] : memref<16x32xf32, #tpu.memory_space<vmem>>, vector<16x32xf32>
    tpu.vector_store %arg9[%c0_79, %c0_80], %182 {strides = array<i32>} : memref<16x32xf32, #tpu.memory_space<vmem>>, vector<16x32xf32>,
    return
  }
  func.func @transform_0(%arg0: i32) -> (i32, i32) {
    %c0_i32 = arith.constant 0 : i32
    %c0_i32_0 = arith.constant 0 : i32
    return %arg0, %c0_i32 : i32, i32
  }
  func.func @transform_1(%arg0: i32) -> (i32, i32) {
    %c0_i32 = arith.constant 0 : i32
    %c0_i32_0 = arith.constant 0 : i32
    return %arg0, %c0_i32 : i32, i32
  }
  func.func @transform_2(%arg0: i32) -> (i32, i32) {
    %c0_i32 = arith.constant 0 : i32
    %c0_i32_0 = arith.constant 0 : i32
    %c0_i32_1 = arith.constant 0 : i32
    return %c0_i32, %c0_i32_0 : i32, i32
  }
  func.func @transform_3(%arg0: i32) -> (i32, i32) {
    %c0_i32 = arith.constant 0 : i32
    %c0_i32_0 = arith.constant 0 : i32
    %c0_i32_1 = arith.constant 0 : i32
    return %c0_i32, %c0_i32_0 : i32, i32
  }
  func.func @transform_4(%arg0: i32) -> (i32, i32) {
    %c0_i32 = arith.constant 0 : i32
    %c0_i32_0 = arith.constant 0 : i32
    %c0_i32_1 = arith.constant 0 : i32
    return %c0_i32, %c0_i32_0 : i32, i32
  }
  func.func @transform_5(%arg0: i32) -> (i32, i32) {
    %c0_i32 = arith.constant 0 : i32
    %c0_i32_0 = arith.constant 0 : i32
    %c0_i32_1 = arith.constant 0 : i32
    return %c0_i32, %c0_i32_0 : i32, i32
  }
  func.func @transform_6(%arg0: i32) -> (i32, i32) {
    %c0_i32 = arith.constant 0 : i32
    %c0_i32_0 = arith.constant 0 : i32
    %c0_i32_1 = arith.constant 0 : i32
    return %c0_i32, %c0_i32_0 : i32, i32
  }
  func.func @transform_7(%arg0: i32) -> (i32, i32) {
    %c0_i32 = arith.constant 0 : i32
    %c0_i32_0 = arith.constant 0 : i32
    %c0_i32_1 = arith.constant 0 : i32
    return %c0_i32, %c0_i32_0 : i32, i32
  }
  func.func @transform_8(%arg0: i32) -> (i32, i32) {
    %c0_i32 = arith.constant 0 : i32
    %c0_i32_0 = arith.constant 0 : i32
    return %arg0, %c0_i32 : i32, i32
  }
}

</mosaic_0001>

<bundles_post_ra>
// kernel: tpu_custom_call.1
= control target key start
LH: loop header
LB: loop body
LE: loop exit
PB: predicated region body
PF: predicated region fallthrough
CT: control target
= control target key end

     0   :  { %v59_v2 = vlaneseq  ;;  %v1467_v16 = vmov 0   ;;  %s1965_s0 = inlined_call_operand.vmem [shape: s32[16,1], index: 0, kind: input, shape index: {}]   ;;  %s1966_s1 = inlined_call_operand.vmem [shape: f32[16,32], index: 1, kind: input, shape index: {}]   ;;  %s1967_s2 = inlined_call_operand.vmem [shape: f32[96,16], index: 2, kind: input, shape index: {}]   ;;  %s1968_s3 = inlined_call_operand.vmem [shape: f32[1,16], index: 3, kind: input, shape index: {}]   ;;  %s1969_s4 = inlined_call_operand.vmem [shape: f32[48,16], index: 4, kind: input, shape index: {}]   ;;  %s1970_s5 = inlined_call_operand.vmem [shape: f32[1,16], index: 5, kind: input, shape index: {}]   ;;  %s1971_s6 = inlined_call_operand.vmem [shape: f32[16,32], index: 6, kind: input, shape index: {}]   ;;  %s1972_s7 = inlined_call_operand.vmem [shape: f32[1,32], index: 7, kind: input, shape index: {}]   ;;  %s1973_s8 = inlined_call_operand.hbm [shape: f32[16,32], index: 8, kind: output, shape index: {}]  }
   0x1   :  { %v1522_v0 = vld [vmem:[%s1966_s1] sm:$0xff]  ;;  %v1527_v1 = vld [vmem:[%s1966_s1 + $0x8] sm:$0xff]  ;;  %v36_v9 = vld [vmem:[%s1967_s2 + $0x10] sm:$0xff]  ;;  %1442 = vset.pattern.permute.xlu1 %v1467_v16 }
   0x2   :  { %v34_v3 = vld [vmem:[%s1967_s2] sm:$0xff]  ;;  %v57_v4 = vrot.slane %v1522_v0, 1  ;;  %v58_v5 = vrot.slane %v1527_v1, 1  ;;  %v64_v6 = vrot.slane %v1522_v0, 2  ;;  %v65_v7 = vrot.slane %v1527_v1, 2  ;;  %v35_v8 = vld [vmem:[%s1967_s2 + $0x8] sm:$0xff] }
   0x3   :  { %v1542_v10 = vshrl.u32 %v59_v2, 7  ;;  %v1334_v11 = vpack.c.bf16 %v35_v8, %v34_v3  ;;  %v37_v12 = vld [vmem:[%s1967_s2 + $0x18] sm:$0xff]  ;;  %v38_v14 = vld [vmem:[%s1967_s2 + $0x20] sm:$0xff]  ;;  %v39_v15 = vld [vmem:[%s1967_s2 + $0x28] sm:$0xff] }
   0x4   :  { %v1338_v13 = vpack.c.bf16 %v37_v12, %v36_v9  ;;  %v1563_v19 = vld [vmem:[%s1965_s0 + $0x8] sm:$0xff] }
   0x5   :  { %vm61_vm0 = vcmp.lt.s32.totalorder %v1542_v10, 7  ;;  %vm66_vm1 = vcmp.lt.s32.totalorder %v1542_v10, 6  ;;  %1335 = vmatprep.subr.bf16.mxu0 %v1334_v11 }
   0x6   :  { %v62_v17 = vsel %vm61_vm0, %v57_v4, %v58_v5  ;;  %v67_v18 = vsel %vm66_vm1, %v64_v6, %v65_v7  ;;  %1337 = vmatpush3.bf16.msra.mxu0 %v1334_v11 }
   0x7   :  { %13 = vsyncpa [#allocation3], 0  ;;  %s1468_s22 = smov 32   ;;  %s1469_s23 = smov 64   ;;  %v1569_v20 = vld [vmem:[%s1965_s0] sm:$0xff]  ;;  %v63_v21 = vsel %vm61_vm0, %v58_v5, %v57_v4  ;;  %v68_v22 = vsel %vm66_vm1, %v65_v7, %v64_v6  ;;  %1339 = vmatprep.subr.bf16.mxu0 %v1338_v13  ;;  %v1342_v23 = vpack.c.bf16 %v39_v15, %v38_v14  ;;  %v40_v24 = vld [vmem:[%s1967_s2 + $0x30] sm:$0xff]  ;;  %1441 = vset.pattern.permute.xlu0 %v1467_v16 }
   0x8   :  { %71 = vrot.lane.b32.xlu0 %v62_v17, %s1468_s22  ;;  %79 = vrot.lane.b32.xlu1 %v67_v18, %s1469_s23  ;;  %v41_v25 = vld [vmem:[%s1967_s2 + $0x38] sm:$0xff]  ;;  %vm180_vm2 = vcmp.lt.s32.totalorder %v1563_v19, 6  ;;  %vm179_vm3 = vcmp.lt.s32.totalorder %v1569_v20, 6  ;;  %v42_v27 = vld [vmem:[%s1967_s2 + $0x40] sm:$0xff]  ;;  %vm193_vm4 = vcmp.eq.s32.totalorder %v1569_v20, 0  ;;  %vm194_vm5 = vcmp.eq.s32.totalorder %v1563_v19, 0 }
   0x9   :  { %v1346_v26 = vpack.c.bf16 %v41_v25, %v40_v24  ;;  %v43_v28 = vld [vmem:[%s1967_s2 + $0x48] sm:$0xff]  ;;  %v182_v29 = vsel %vm180_vm2, 1, %v1467_v16  ;;  %v181_v30 = vsel %vm179_vm3, 1, %v1467_v16  ;;  %v44_v32 = vld [vmem:[%s1967_s2 + $0x50] sm:$0xff]  ;;  %v45_v33 = vld [vmem:[%s1967_s2 + $0x58] sm:$0xff]  ;;  %v200_v34 = vsel %vm193_vm4, 1, %v1467_v16 }
   0xa   :  { %1341 = vmatpush3.bf16.msra.mxu0 %v1338_v13  ;;  %v1350_v31 = vpack.c.bf16 %v43_v28, %v42_v27  ;;  %v201_v35 = vsel %vm194_vm5, 1, %v1467_v16  ;;  %v1354_v36 = vpack.c.bf16 %v45_v33, %v44_v32  ;;  %vm85_vm6 = vcmask 261120   ;;  %v47_v45 = vld [vmem:[%s1969_s4] sm:$0xff]  ;;  %v48_v46 = vld [vmem:[%s1969_s4 + $0x8] sm:$0xff]  ;;  %v49_v47 = vld [vmem:[%s1969_s4 + $0x10] sm:$0xff]  ;;  %s1471_s9 = smov [#allocation2]  }
   0xb   :  { %1343 = vmatprep.subr.bf16.mxu0 %v1342_v23  ;;  %vm88_vm7 = vcmask 523264   ;;  %vm97_vm8 = vcmask 785408   ;;  %v1616_v48 = vpack.c.bf16 %v48_v46, %v47_v45  ;;  %v50_v49 = vld [vmem:[%s1969_s4 + $0x18] sm:$0xff]  ;;  %v1125_v53 = vld [vmem:[%s1968_s3] ss:$0 sm:$0xff]  ;;  %v52_v56 = vld [vmem:[%s1969_s4 + $0x28] sm:$0xff] }
   0xc   :  { %73 = vrot.lane.b32.xlu0 %v63_v21, %s1468_s22  ;;  %81 = vrot.lane.b32.xlu1 %v68_v22, %s1469_s23  ;;  %v1621_v50 = vpack.c.bf16 %v50_v49, %v49_v47  ;;  %v51_v55 = vld [vmem:[%s1969_s4 + $0x20] sm:$0xff]  ;;  %vm197_vm11 = vcmp.lt.s32.totalorder %v1542_v10, 1  ;;  %s1470_s3 = smov 16   ;;  %vm238_vm14 = vcmask 130048   ;;  %vm249_vm15 = vcmask 392192   ;;  %s1114_s10 = sshll.u32 %s1471_s9, 4  ;;  %s1115_s10 = int_to_ptr.vmem [resolvable:$true] %s1114_s10 }
   0xd   :  { %1359 = vmatprep.subr.bf16.mxu1 %v1616_v48  ;;  %v1646_v59 = vpack.c.bf16 %v52_v56, %v51_v55  ;;  %vm467_vm2 = vcmp.eq.s32.totalorder %v1563_v19, 1  ;;  %vm466_vm3 = vcmp.eq.s32.totalorder %v1569_v20, 1  ;;  %vm485_vm4 = vcmp.eq.s32.totalorder %v1563_v19, 2  ;;  %v54_v10 = vld [vmem:[%s1971_s6] sm:$0xff]  ;;  %s1443_s11 = scalar_lea.vmem %s1115_s10, 256  ;;  %p1448_p1 = scmp.lt.s32.totalorder %s1115_s10, %s1115_s10 }
   0xe   :  { %1345 = vmatpush3.bf16.msra.mxu0 %v1342_v23  ;;  %1361 = vmatpush3.bf16.msra.mxu1 %v1616_v48  ;;  %v473_v56 = vsel %vm467_vm2, 1, %v1467_v16  ;;  %vm484_vm5 = vcmp.eq.s32.totalorder %v1569_v20, 2  ;;  %vm620_vm2 = vcmp.lt.s32.totalorder %v1563_v19, 3  ;;  %p1444_p0 = scmp.ne.s32.totalorder %s1115_s10, %s1443_s11  ;;  %p1449_p2 = scmp.lt.s32.totalorder %s1443_s11, %s1443_s11 }
   0xf   :  { %1347 = vmatprep.subr.bf16.mxu0 %v1346_v26  ;;  %1363 = vmatprep.subr.bf16.mxu1 %v1621_v50 }
  0x10   :  { %187 = vperm.xlu1 %1442, %v182_v29   ;;  %184 = vperm.xlu0 %1441, %v181_v30   ;;  %v1700_v29 = vld [vmem:[%s1970_s5] ss:$0 sm:$0xff]  ;;  %p1450_p3 = por %p1449_p2, %p1448_p1 }
  0x12   :  { %1349 = vmatpush3.bf16.msra.mxu0 %v1346_v26  ;;  %1365 = vmatpush3.bf16.msra.mxu1 %v1621_v50  ;;  %p1451_p4 = pnand %p1450_p3, %p1444_p0 }
  0x13   :  { %1351 = vmatprep.subr.bf16.mxu0 %v1350_v31  ;;  %1367 = vmatprep.subr.bf16.mxu1 %v1646_v59 }
  0x14   :  { %203 = vperm.xlu1 %1442, %v200_v34   ;;  %206 = vperm.xlu0 %1441, %v201_v35  }
  0x16   :  { %1353 = vmatpush3.bf16.msra.mxu0 %v1350_v31  ;;  %1369 = vmatpush3.bf16.msra.mxu1 %v1646_v59 }
  0x17   :  { %1355 = vmatprep.subr.bf16.mxu0 %v1354_v36  ;;  %1371 = vmatprep.subr.bf16.mxu1 %v1616_v48 }
  0x1a   :  { %1357 = vmatpush3.bf16.msra.mxu0 %v1354_v36 }
  0x1b   :  { %1383 = vmatprep.subr.bf16.mxu0 %v1616_v48 }
  0x7a   :  { %v72_v37 = vpop.permute.xlu0 %71  ;;  %v80_v38 = vpop.permute.xlu1 %79 }
  0x7b   :  { %v86_v39 = vsel %vm85_vm6, %v1522_v0, %v72_v37 }
  0x7c   :  { %v89_v40 = vsel %vm88_vm7, %v86_v39, %v80_v38 }
  0x7d   :  { %1234 = vmatprep.mubr.msk.f32.mxu0 %vm97_vm8, %v89_v40 }
  0x7e   :  { %v74_v41 = vpop.permute.xlu0 %73  ;;  %v82_v42 = vpop.permute.xlu1 %81 }
  0x7f   :  { %v87_v43 = vsel %vm85_vm6, %v1527_v1, %v74_v41 }
  0x80   :  { %v90_v44 = vsel %vm88_vm7, %v87_v43, %v82_v42 }
  0x81   :  { %1235 = vmatmul.mubr.msk.f32.vlgmr.msra.gmra.mrb[0].mxu0 %vm97_vm8, %v90_v44 }
  0x82   :  { %1385 = vmatpush3.bf16.msra.mxu0 %v1616_v48 }
  0x83   :  { %1387 = vmatprep.subr.bf16.mxu0 %v1621_v50 }
  0x86   :  { %1389 = vmatpush3.bf16.msra.mxu0 %v1621_v50 }
  0x87   :  { %1391 = vmatprep.subr.bf16.mxu0 %v1646_v59 }
  0x8a   :  { %1393 = vmatpush3.bf16.msra.mxu0 %v1646_v59 }
  0x8b   :  { %1407 = vmatprep.subr.bf16.mxu0 %v1616_v48 }
  0x8f   :  { %v1631_v51 = vpop.permute.xlu1 %187  ;;  %v1633_v52 = vpop.permute.xlu0 %184 }
  0x90   :  { %vm190_vm9 = vcmp.eq.s32.totalorder %v1631_v51, 1  ;;  %vm189_vm10 = vcmp.eq.s32.totalorder %v1633_v52, 1 }
  0x93   :  { %v1655_v0 = vpop.permute.xlu1 %203  ;;  %v1657_v1 = vpop.permute.xlu0 %206 }
  0x94   :  { %vm208_vm12 = vcmp.eq.s32.totalorder %v1655_v0, 1  ;;  %vm209_vm13 = vcmp.eq.s32.totalorder %v1657_v1, 1 }
 0x154   :  { %v1236_v54 = vpop.f32.mrb[0].mxu0 }
 0x155   :  { %v176_v57 = vadd.f32 %v1236_v54, %v1125_v53  ;;  %v170_v58 = vpop.f32.mrb[1].mxu0 }
 0x156   :  { %v171_v60 = vadd.f32 %v1125_v53, %v170_v58  ;;  %v491_v58 = vsel %vm485_vm4, 1, %v1467_v16 }
 0x157   :  { %v192_v61 = vsel %vm190_vm9, %v176_v57, 0.0  ;;  %v472_v57 = vsel %vm466_vm3, 1, %v1467_v16  ;;  %vm619_vm3 = vcmp.lt.s32.totalorder %v1569_v20, 3 }
 0x158   :  { %v196_v62 = vrot.slane %v192_v61, 7  ;;  %v191_v63 = vsel %vm189_vm10, %v171_v60, 0.0  ;;  %v490_v60 = vsel %vm484_vm5, 1, %v1467_v16 }
 0x159   :  { %v195_v2 = vrot.slane %v191_v63, 7 }
 0x15b   :  { %v198_v3 = vsel %vm197_vm11, %v195_v2, %v196_v62  ;;  %v199_v4 = vsel %vm197_vm11, %v196_v62, %v195_v2 }
 0x15c   :  { %v210_v5 = vsel %vm208_vm12, 0.0, %v199_v4  ;;  %v211_v6 = vsel %vm209_vm13, 0.0, %v198_v3 }
 0x15d   :  { %v212_v7 = vmax.f32 %v210_v5, 0.0  ;;  %v213_v8 = vmax.f32 %v211_v6, 0.0 }
 0x15f   :  { %v214_v9 = vrot.slane %v212_v7, 1  ;;  %v215_v11 = vrot.slane %v213_v8, 1  ;;  %v218_v14 = vrot.slane %v212_v7, 2  ;;  %v219_v15 = vrot.slane %v213_v8, 2 }
 0x161   :  { %v217_v12 = vsel %vm61_vm0, %v215_v11, %v214_v9  ;;  %v216_v13 = vsel %vm61_vm0, %v214_v9, %v215_v11  ;;  %v221_v17 = vsel %vm66_vm1, %v219_v15, %v218_v14  ;;  %v220_v18 = vsel %vm66_vm1, %v218_v14, %v219_v15 }
 0x162   :  { %226 = vrot.lane.b32.xlu0 %v217_v12, %s1470_s3  ;;  %224 = vrot.lane.b32.xlu1 %v216_v13, %s1470_s3 }
 0x166   :  { %234 = vrot.lane.b32.xlu0 %v221_v17, %s1468_s22  ;;  %232 = vrot.lane.b32.xlu1 %v220_v18, %s1468_s22 }
 0x1d4   :  { %v227_v21 = vpop.permute.xlu0 %226  ;;  %v225_v22 = vpop.permute.xlu1 %224 }
 0x1d5   :  { %v240_v23 = vsel %vm238_vm14, %v213_v8, %v227_v21  ;;  %v239_v24 = vsel %vm238_vm14, %v212_v7, %v225_v22 }
 0x1d8   :  { %v235_v25 = vpop.permute.xlu0 %234  ;;  %v233_v26 = vpop.permute.xlu1 %232 }
 0x1d9   :  { %v242_v27 = vsel %vm85_vm6, %v240_v23, %v235_v25  ;;  %v241_v28 = vsel %vm85_vm6, %v239_v24, %v233_v26 }
 0x1da   :  { %1249 = vmatprep.mubr.msk.f32.mxu1 %vm249_vm15, %v241_v28 }
 0x1db   :  { %1250 = vmatmul.mubr.msk.f32.vlgmr.msra.gmra.mrb[0].mxu1 %vm249_vm15, %v242_v27 }
 0x1dc   :  { %1373 = vmatpush3.bf16.msra.mxu1 %v1616_v48 }
 0x1dd   :  { %1375 = vmatprep.subr.bf16.mxu1 %v1621_v50 }
 0x1e0   :  { %1377 = vmatpush3.bf16.msra.mxu1 %v1621_v50 }
 0x1e1   :  { %1379 = vmatprep.subr.bf16.mxu1 %v1646_v59 }
 0x1e4   :  { %1381 = vmatpush3.bf16.msra.mxu1 %v1646_v59 }
 0x1e5   :  { %1395 = vmatprep.subr.bf16.mxu1 %v1616_v48 }
 0x2ae   :  { %v1251_v30 = vpop.f32.mrb[0].mxu1 }
 0x2af   :  { %v328_v31 = vadd.f32 %v1251_v30, %v1700_v29  ;;  %v322_v32 = vpop.f32.mrb[1].mxu1 }
 0x2b0   :  { %v323_v33 = vadd.f32 %v1700_v29, %v322_v32 }
 0x2b1   :  { %v332_v34 = vsel %vm190_vm9, %v328_v31, 0.0 }
 0x2b2   :  { %v334_v35 = vrot.slane %v332_v34, 7  ;;  %v331_v36 = vsel %vm189_vm10, %v323_v33, 0.0 }
 0x2b3   :  { %v333_v37 = vrot.slane %v331_v36, 7 }
 0x2b5   :  { %v335_v38 = vsel %vm197_vm11, %v333_v37, %v334_v35  ;;  %v336_v39 = vsel %vm197_vm11, %v334_v35, %v333_v37 }
 0x2b6   :  { %v337_v40 = vsel %vm208_vm12, 0.0, %v336_v39  ;;  %v338_v41 = vsel %vm209_vm13, 0.0, %v335_v38 }
 0x2b7   :  { %v339_v42 = vmax.f32 %v337_v40, 0.0  ;;  %v340_v43 = vmax.f32 %v338_v41, 0.0 }
 0x2b9   :  { %v341_v44 = vrot.slane %v339_v42, 1  ;;  %v342_v45 = vrot.slane %v340_v43, 1  ;;  %v345_v49 = vrot.slane %v339_v42, 2  ;;  %v346_v53 = vrot.slane %v340_v43, 2 }
 0x2bb   :  { %v344_v46 = vsel %vm61_vm0, %v342_v45, %v341_v44  ;;  %v343_v47 = vsel %vm61_vm0, %v341_v44, %v342_v45  ;;  %v348_v54 = vsel %vm66_vm1, %v346_v53, %v345_v49  ;;  %v347_v55 = vsel %vm66_vm1, %v345_v49, %v346_v53 }
 0x2bc   :  { %353 = vrot.lane.b32.xlu0 %v344_v46, %s1470_s3  ;;  %351 = vrot.lane.b32.xlu1 %v343_v47, %s1470_s3 }
 0x2c0   :  { %361 = vrot.lane.b32.xlu0 %v348_v54, %s1468_s22  ;;  %359 = vrot.lane.b32.xlu1 %v347_v55, %s1468_s22 }
 0x2c4   :  { %478 = vperm.xlu0 %1441, %v473_v56   ;;  %475 = vperm.xlu1 %1442, %v472_v57  }
 0x2c8   :  { %496 = vperm.xlu0 %1441, %v491_v58   ;;  %493 = vperm.xlu1 %1442, %v490_v60  }
 0x32e   :  { %v354_v61 = vpop.permute.xlu0 %353  ;;  %v352_v62 = vpop.permute.xlu1 %351 }
 0x32f   :  { %v366_v63 = vsel %vm238_vm14, %v340_v43, %v354_v61  ;;  %v365_v2 = vsel %vm238_vm14, %v339_v42, %v352_v62 }
 0x332   :  { %v362_v3 = vpop.permute.xlu0 %361  ;;  %v360_v4 = vpop.permute.xlu1 %359 }
 0x333   :  { %v368_v5 = vsel %vm85_vm6, %v366_v63, %v362_v3  ;;  %v367_v6 = vsel %vm85_vm6, %v365_v2, %v360_v4 }
 0x334   :  { %1264 = vmatprep.mubr.msk.f32.mxu1 %vm249_vm15, %v367_v6  ;;  %v621_v6 = vsel %vm619_vm3, 1, %v1467_v16 }
 0x335   :  { %1265 = vmatmul.mubr.msk.f32.vlgmr.msra.gmra.mrb[2].mxu1 %vm249_vm15, %v368_v5  ;;  %v622_v5 = vsel %vm620_vm2, 1, %v1467_v16 }
 0x336   :  { %1397 = vmatpush3.bf16.msra.mxu1 %v1616_v48 }
 0x337   :  { %1399 = vmatprep.subr.bf16.mxu1 %v1621_v50 }
 0x33a   :  { %1401 = vmatpush3.bf16.msra.mxu1 %v1621_v50 }
 0x33b   :  { %1403 = vmatprep.subr.bf16.mxu1 %v1646_v59 }
 0x33e   :  { %1405 = vmatpush3.bf16.msra.mxu1 %v1646_v59 }
 0x33f   :  { %1419 = vmatprep.subr.bf16.mxu1 %v1616_v48 }
 0x343   :  { %v479_v13 = vpop.permute.xlu0 %478  ;;  %v476_v14 = vpop.permute.xlu1 %475 }
 0x344   :  { %vm481_vm7 = vcmp.eq.s32.totalorder %v479_v13, 1  ;;  %vm480_vm8 = vcmp.eq.s32.totalorder %v476_v14, 1 }
 0x347   :  { %v497_v28 = vpop.permute.xlu0 %496  ;;  %v494_v30 = vpop.permute.xlu1 %493 }
 0x408   :  { %v1266_v7 = vpop.f32.mrb[2].mxu1 }
 0x409   :  { %v447_v8 = vadd.f32 %v1266_v7, %v1700_v29  ;;  %v441_v9 = vpop.f32.mrb[3].mxu1 }
 0x40a   :  { %v442_v11 = vadd.f32 %v1700_v29, %v441_v9 }
 0x40b   :  { %v451_v12 = vsel %vm190_vm9, %v447_v8, 0.0  ;;  %vm499_vm9 = vcmp.eq.s32.totalorder %v497_v28, 1 }
 0x40c   :  { %v453_v15 = vrot.slane %v451_v12, 1  ;;  %v459_v17 = vrot.slane %v451_v12, 2  ;;  %v450_v18 = vsel %vm189_vm10, %v442_v11, 0.0  ;;  %vm498_vm10 = vcmp.eq.s32.totalorder %v494_v30, 1 }
 0x40d   :  { %v452_v21 = vrot.slane %v450_v18, 1  ;;  %v458_v22 = vrot.slane %v450_v18, 2 }
 0x40f   :  { %v454_v23 = vsel %vm61_vm0, %v452_v21, %v453_v15  ;;  %v455_v24 = vsel %vm61_vm0, %v453_v15, %v452_v21  ;;  %v460_v25 = vsel %vm66_vm1, %v458_v22, %v459_v17  ;;  %v461_v51 = vsel %vm66_vm1, %v459_v17, %v458_v22 }
 0x410   :  { %v456_v26 = vmax.f32 %v450_v18, %v454_v23  ;;  %v457_v27 = vmax.f32 %v451_v12, %v455_v24 }
 0x412   :  { %v462_v52 = vmax.f32 %v456_v26, %v460_v25  ;;  %v463_v31 = vmax.f32 %v457_v27, %v461_v51 }
 0x414   :  { %v468_v32 = vrot.slane %v462_v52, 1  ;;  %v469_v33 = vrot.slane %v463_v31, 1  ;;  %v486_v34 = vrot.slane %v462_v52, 2  ;;  %v487_v35 = vrot.slane %v463_v31, 2 }
 0x415   :  { %v464_v36 = vsel %vm208_vm12, %v462_v52, 0.0  ;;  %v465_v37 = vsel %vm209_vm13, %v463_v31, 0.0 }
 0x416   :  { %v470_v38 = vsel %vm61_vm0, %v468_v32, %v469_v33  ;;  %v471_v39 = vsel %vm61_vm0, %v469_v33, %v468_v32  ;;  %v488_v42 = vsel %vm66_vm1, %v486_v34, %v487_v35  ;;  %v489_v43 = vsel %vm66_vm1, %v487_v35, %v486_v34 }
 0x417   :  { %v482_v40 = vsel %vm480_vm8, %v470_v38, %v464_v36  ;;  %v483_v41 = vsel %vm481_vm7, %v471_v39, %v465_v37  ;;  %vm886_vm7 = vcmp.lt.s32.totalorder %v1563_v19, 1  ;;  %vm885_vm8 = vcmp.lt.s32.totalorder %v1569_v20, 1 }
 0x418   :  { %v1774_v44 = vsel %vm498_vm10, %v488_v42, %v482_v40  ;;  %v1776_v45 = vsel %vm499_vm9, %v489_v43, %v483_v41 }
 0x419   :  { %v502_v46 = vrot.slane %v1774_v44, 7  ;;  %v503_v47 = vrot.slane %v1776_v45, 7 }
 0x41b   :  { %v504_v49 = vsel %vm197_vm11, %v502_v46, %v503_v47  ;;  %v505_v53 = vsel %vm197_vm11, %v503_v47, %v502_v46 }
 0x41c   :  { %v506_v54 = vsel %vm208_vm12, 0.0, %v505_v53  ;;  %v507_v55 = vsel %vm209_vm13, 0.0, %v504_v49 }
 0x41d   :  { %v508_v56 = vmax.f32 %v506_v54, 0.0  ;;  %v509_v57 = vmax.f32 %v507_v55, 0.0 }
 0x41f   :  { %v510_v58 = vrot.slane %v508_v56, 1  ;;  %v511_v60 = vrot.slane %v509_v57, 1  ;;  %v514_v63 = vrot.slane %v508_v56, 2  ;;  %v515_v2 = vrot.slane %v509_v57, 2 }
 0x421   :  { %v513_v61 = vsel %vm61_vm0, %v511_v60, %v510_v58  ;;  %v512_v62 = vsel %vm61_vm0, %v510_v58, %v511_v60  ;;  %v517_v3 = vsel %vm66_vm1, %v515_v2, %v514_v63  ;;  %v516_v4 = vsel %vm66_vm1, %v514_v63, %v515_v2 }
 0x422   :  { %522 = vrot.lane.b32.xlu0 %v513_v61, %s1470_s3  ;;  %520 = vrot.lane.b32.xlu1 %v512_v62, %s1470_s3 }
 0x426   :  { %530 = vrot.lane.b32.xlu0 %v517_v3, %s1468_s22  ;;  %528 = vrot.lane.b32.xlu1 %v516_v4, %s1468_s22 }
 0x42a   :  { %627 = vperm.xlu0 %1441, %v622_v5   ;;  %624 = vperm.xlu1 %1442, %v621_v6  }
 0x494   :  { %v523_v7 = vpop.permute.xlu0 %522  ;;  %v521_v8 = vpop.permute.xlu1 %520 }
 0x495   :  { %v535_v9 = vsel %vm238_vm14, %v509_v57, %v523_v7  ;;  %v534_v11 = vsel %vm238_vm14, %v508_v56, %v521_v8 }
 0x498   :  { %v531_v12 = vpop.permute.xlu0 %530  ;;  %v529_v13 = vpop.permute.xlu1 %528 }
 0x499   :  { %v537_v14 = vsel %vm85_vm6, %v535_v9, %v531_v12  ;;  %v536_v15 = vsel %vm85_vm6, %v534_v11, %v529_v13 }
 0x49a   :  { %1279 = vmatprep.mubr.msk.f32.mxu0 %vm249_vm15, %v536_v15 }
 0x49b   :  { %1280 = vmatmul.mubr.msk.f32.vlgmr.msra.gmra.mrb[2].mxu0 %vm249_vm15, %v537_v14 }
 0x49c   :  { %1409 = vmatpush3.bf16.msra.mxu0 %v1616_v48 }
 0x49d   :  { %1411 = vmatprep.subr.bf16.mxu0 %v1621_v50 }
 0x4a0   :  { %1413 = vmatpush3.bf16.msra.mxu0 %v1621_v50 }
 0x4a1   :  { %1415 = vmatprep.subr.bf16.mxu0 %v1646_v59 }
 0x4a4   :  { %1417 = vmatpush3.bf16.msra.mxu0 %v1646_v59 }
 0x4a9   :  { %v628_v17 = vpop.permute.xlu0 %627  ;;  %v625_v18 = vpop.permute.xlu1 %624 }
 0x4aa   :  { %vm630_vm4 = vcmp.eq.s32.totalorder %v628_v17, 1  ;;  %vm629_vm5 = vcmp.eq.s32.totalorder %v625_v18, 1 }
 0x56e   :  { %v1281_v21 = vpop.f32.mrb[2].mxu0 }
 0x56f   :  { %v616_v22 = vadd.f32 %v1281_v21, %v1700_v29  ;;  %v610_v23 = vpop.f32.mrb[3].mxu0 }
 0x570   :  { %v611_v24 = vadd.f32 %v1700_v29, %v610_v23 }
 0x571   :  { %v632_v25 = vsel %vm630_vm4, %v616_v22, 0.0 }
 0x572   :  { %v634_v51 = vrot.slane %v632_v25, 7  ;;  %v631_v26 = vsel %vm629_vm5, %v611_v24, 0.0 }
 0x573   :  { %v633_v27 = vrot.slane %v631_v26, 7 }
 0x575   :  { %v635_v28 = vsel %vm197_vm11, %v633_v27, %v634_v51  ;;  %v636_v30 = vsel %vm197_vm11, %v634_v51, %v633_v27 }
 0x576   :  { %v637_v52 = vsel %vm208_vm12, 0.0, %v636_v30  ;;  %v638_v31 = vsel %vm209_vm13, 0.0, %v635_v28 }
 0x577   :  { %v639_v32 = vmax.f32 %v637_v52, 0.0  ;;  %v640_v33 = vmax.f32 %v638_v31, 0.0  ;;  %v888_v31 = vsel %vm886_vm7, 1, %v1467_v16 }
 0x579   :  { %v641_v34 = vrot.slane %v639_v32, 1  ;;  %v642_v35 = vrot.slane %v640_v33, 1  ;;  %v645_v38 = vrot.slane %v639_v32, 2  ;;  %v646_v39 = vrot.slane %v640_v33, 2 }
 0x57b   :  { %v644_v36 = vsel %vm61_vm0, %v642_v35, %v641_v34  ;;  %v643_v37 = vsel %vm61_vm0, %v641_v34, %v642_v35  ;;  %v648_v40 = vsel %vm66_vm1, %v646_v39, %v645_v38  ;;  %v647_v41 = vsel %vm66_vm1, %v645_v38, %v646_v39 }
 0x57c   :  { %653 = vrot.lane.b32.xlu0 %v644_v36, %s1470_s3  ;;  %651 = vrot.lane.b32.xlu1 %v643_v37, %s1470_s3 }
 0x580   :  { %661 = vrot.lane.b32.xlu0 %v648_v40, %s1468_s22  ;;  %659 = vrot.lane.b32.xlu1 %v647_v41, %s1468_s22 }
 0x5ee   :  { %v654_v42 = vpop.permute.xlu0 %653  ;;  %v652_v43 = vpop.permute.xlu1 %651 }
 0x5ef   :  { %v666_v46 = vsel %vm238_vm14, %v640_v33, %v654_v42  ;;  %v665_v47 = vsel %vm238_vm14, %v639_v32, %v652_v43  ;;  %v887_v32 = vsel %vm885_vm8, 1, %v1467_v16 }
 0x5f2   :  { %v662_v49 = vpop.permute.xlu0 %661  ;;  %v660_v53 = vpop.permute.xlu1 %659 }
 0x5f3   :  { %v668_v54 = vsel %vm85_vm6, %v666_v46, %v662_v49  ;;  %v667_v55 = vsel %vm85_vm6, %v665_v47, %v660_v53 }
 0x5f4   :  { %1294 = vmatprep.mubr.msk.f32.mxu1 %vm249_vm15, %v667_v55 }
 0x5f5   :  { %1295 = vmatmul.mubr.msk.f32.vlgmr.msra.gmra.mrb[4].mxu1 %vm249_vm15, %v668_v54 }
 0x5f6   :  { %1421 = vmatpush3.bf16.msra.mxu1 %v1616_v48 }
 0x5f7   :  { %1423 = vmatprep.subr.bf16.mxu1 %v1621_v50 }
 0x5fa   :  { %1425 = vmatpush3.bf16.msra.mxu1 %v1621_v50 }
 0x5fb   :  { %1427 = vmatprep.subr.bf16.mxu1 %v1646_v59 }
 0x5fe   :  { %1429 = vmatpush3.bf16.msra.mxu1 %v1646_v59 }
 0x6c8   :  { %v1296_v56 = vpop.f32.mrb[4].mxu1 }
 0x6c9   :  { %v747_v57 = vadd.f32 %v1296_v56, %v1700_v29  ;;  %v741_v58 = vpop.f32.mrb[5].mxu1 }
 0x6ca   :  { %v742_v60 = vadd.f32 %v1700_v29, %v741_v58 }
 0x6cb   :  { %v751_v61 = vsel %vm630_vm4, %v747_v57, 0.0 }
 0x6cc   :  { %v753_v62 = vadd.f32 %v751_v61, %v1776_v45  ;;  %v750_v48 = vsel %vm629_vm5, %v742_v60, 0.0 }
 0x6cd   :  { %v752_v63 = vadd.f32 %v750_v48, %v1774_v44 }
 0x6ce   :  { %v755_v2 = vrot.slane %v753_v62, 1  ;;  %v761_v50 = vrot.slane %v753_v62, 2 }
 0x6cf   :  { %v754_v3 = vrot.slane %v752_v63, 1  ;;  %v760_v4 = vrot.slane %v752_v63, 2 }
 0x6d1   :  { %v756_v59 = vsel %vm61_vm0, %v754_v3, %v755_v2  ;;  %v757_v5 = vsel %vm61_vm0, %v755_v2, %v754_v3  ;;  %v762_v6 = vsel %vm66_vm1, %v760_v4, %v761_v50  ;;  %v763_v45 = vsel %vm66_vm1, %v761_v50, %v760_v4 }
 0x6d2   :  { %v758_v7 = vmax.f32 %v752_v63, %v756_v59  ;;  %v759_v8 = vmax.f32 %v753_v62, %v757_v5 }
 0x6d4   :  { %v764_v9 = vmax.f32 %v758_v7, %v762_v6  ;;  %v765_v44 = vmax.f32 %v759_v8, %v763_v45 }
 0x6d6   :  { %v1866_v11 = vsel %vm208_vm12, %v764_v9, 0.0  ;;  %v1870_v12 = vsel %vm209_vm13, %v765_v44, 0.0  ;;  %v55_v9 = vld [vmem:[%s1971_s6 + $0x8] sm:$0xff] }
 0x6d7   :  { %v768_v13 = vrot.slane %v1866_v11, 7  ;;  %v769_v14 = vrot.slane %v1870_v12, 7  ;;  %v1430_v44 = vpack.c.bf16 %v55_v9, %v54_v10 }
 0x6d9   :  { %v770_v15 = vsel %vm197_vm11, %v768_v13, %v769_v14  ;;  %v771_v17 = vsel %vm197_vm11, %v769_v14, %v768_v13  ;;  %1431 = vmatprep.subr.bf16.mxu0 %v1430_v44 }
 0x6da   :  { %v772_v18 = vsel %vm208_vm12, 0.0, %v771_v17  ;;  %v773_v21 = vsel %vm209_vm13, 0.0, %v770_v15 }
 0x6db   :  { %v774_v22 = vmax.f32 %v772_v18, 0.0  ;;  %v775_v23 = vmax.f32 %v773_v21, 0.0 }
 0x6dd   :  { %v776_v24 = vrot.slane %v774_v22, 1  ;;  %v777_v25 = vrot.slane %v775_v23, 1  ;;  %v780_v27 = vrot.slane %v774_v22, 2  ;;  %v781_v28 = vrot.slane %v775_v23, 2 }
 0x6df   :  { %v779_v51 = vsel %vm61_vm0, %v777_v25, %v776_v24  ;;  %v778_v26 = vsel %vm61_vm0, %v776_v24, %v777_v25  ;;  %v783_v30 = vsel %vm66_vm1, %v781_v28, %v780_v27  ;;  %v782_v52 = vsel %vm66_vm1, %v780_v27, %v781_v28  ;;  %v1141_v24 = vld [vmem:[%s1972_s7] ss:$0 sm:$0xff] }
 0x6e0   :  { %788 = vrot.lane.b32.xlu0 %v779_v51, %s1470_s3  ;;  %786 = vrot.lane.b32.xlu1 %v778_v26, %s1470_s3 }
 0x6e4   :  { %796 = vrot.lane.b32.xlu0 %v783_v30, %s1468_s22  ;;  %794 = vrot.lane.b32.xlu1 %v782_v52, %s1468_s22 }
 0x6e8   :  { %893 = vperm.xlu0 %1441, %v888_v31   ;;  %890 = vperm.xlu1 %1442, %v887_v32  }
 0x752   :  { %v789_v33 = vpop.permute.xlu0 %788  ;;  %v787_v19 = vpop.permute.xlu1 %786 }
 0x753   :  { %v801_v20 = vsel %vm238_vm14, %v775_v23, %v789_v33  ;;  %v800_v34 = vsel %vm238_vm14, %v774_v22, %v787_v19 }
 0x756   :  { %v797_v35 = vpop.permute.xlu0 %796  ;;  %v795_v36 = vpop.permute.xlu1 %794 }
 0x757   :  { %v803_v37 = vsel %vm85_vm6, %v801_v20, %v797_v35  ;;  %v802_v38 = vsel %vm85_vm6, %v800_v34, %v795_v36 }
 0x758   :  { %1309 = vmatprep.mubr.msk.f32.mxu0 %vm249_vm15, %v802_v38 }
 0x759   :  { %1310 = vmatmul.mubr.msk.f32.vlgmr.msra.gmra.mrb[4].mxu0 %vm249_vm15, %v803_v37 }
 0x75a   :  { %1433 = vmatpush3.bf16.msra.mxu0 %v1430_v44 }
 0x767   :  { %v894_v39 = vpop.permute.xlu0 %893  ;;  %v891_v16 = vpop.permute.xlu1 %890 }
 0x768   :  { %vm896_vm9 = vcmp.eq.s32.totalorder %v894_v39, 1  ;;  %vm895_vm10 = vcmp.eq.s32.totalorder %v891_v16, 1 }
 0x82c   :  { %v1311_v40 = vpop.f32.mrb[4].mxu0 }
 0x82d   :  { %v882_v41 = vadd.f32 %v1311_v40, %v1700_v29  ;;  %v876_v42 = vpop.f32.mrb[5].mxu0 }
 0x82e   :  { %v877_v43 = vadd.f32 %v1700_v29, %v876_v42 }
 0x82f   :  { %v898_v46 = vsel %vm896_vm9, %v882_v41, 0.0 }
 0x830   :  { %v900_v47 = vrot.slane %v898_v46, 7  ;;  %v897_v49 = vsel %vm895_vm10, %v877_v43, 0.0 }
 0x831   :  { %v899_v53 = vrot.slane %v897_v49, 7 }
 0x833   :  { %v901_v54 = vsel %vm197_vm11, %v899_v53, %v900_v47  ;;  %v902_v55 = vsel %vm197_vm11, %v900_v47, %v899_v53 }
 0x834   :  { %v903_v56 = vsel %vm208_vm12, 0.0, %v902_v55  ;;  %v904_v57 = vsel %vm209_vm13, 0.0, %v901_v54 }
 0x835   :  { %v905_v58 = vmax.f32 %v903_v56, 0.0  ;;  %v906_v60 = vmax.f32 %v904_v57, 0.0 }
 0x837   :  { %v907_v61 = vrot.slane %v905_v58, 1  ;;  %v908_v62 = vrot.slane %v906_v60, 1  ;;  %v911_v2 = vrot.slane %v905_v58, 2  ;;  %v912_v50 = vrot.slane %v906_v60, 2 }
 0x839   :  { %v910_v48 = vsel %vm61_vm0, %v908_v62, %v907_v61  ;;  %v909_v63 = vsel %vm61_vm0, %v907_v61, %v908_v62  ;;  %v914_v0 = vsel %vm66_vm1, %v912_v50, %v911_v2  ;;  %v913_v1 = vsel %vm66_vm1, %v911_v2, %v912_v50 }
 0x83a   :  { %919 = vrot.lane.b32.xlu0 %v910_v48, %s1470_s3  ;;  %917 = vrot.lane.b32.xlu1 %v909_v63, %s1470_s3 }
 0x83e   :  { %927 = vrot.lane.b32.xlu0 %v914_v0, %s1468_s22  ;;  %925 = vrot.lane.b32.xlu1 %v913_v1, %s1468_s22 }
 0x8ac   :  { %v920_v3 = vpop.permute.xlu0 %919  ;;  %v918_v4 = vpop.permute.xlu1 %917 }
 0x8ad   :  { %v932_v59 = vsel %vm238_vm14, %v906_v60, %v920_v3  ;;  %v931_v5 = vsel %vm238_vm14, %v905_v58, %v918_v4 }
 0x8b0   :  { %v928_v6 = vpop.permute.xlu0 %927  ;;  %v926_v45 = vpop.permute.xlu1 %925 }
 0x8b1   :  { %v934_v7 = vsel %vm85_vm6, %v932_v59, %v928_v6  ;;  %v933_v8 = vsel %vm85_vm6, %v931_v5, %v926_v45 }
 0x8b2   :  { %1324 = vmatprep.mubr.msk.f32.mxu1 %vm249_vm15, %v933_v8 }
 0x8b3   :  { %1325 = vmatmul.mubr.msk.f32.vlgmr.msra.gmra.mrb[6].mxu1 %vm249_vm15, %v934_v7 }
 0x986   :  { %v1326_v13 = vpop.f32.mrb[6].mxu1 }
 0x987   :  { %v1013_v14 = vadd.f32 %v1326_v13, %v1700_v29  ;;  %v1007_v15 = vpop.f32.mrb[7].mxu1 }
 0x988   :  { %v1008_v17 = vadd.f32 %v1700_v29, %v1007_v15 }
 0x989   :  { %v1017_v18 = vsel %vm896_vm9, %v1013_v14, 0.0 }
 0x98a   :  { %v1016_v21 = vsel %vm895_vm10, %v1008_v17, 0.0  ;;  %v1019_v23 = vadd.f32 %v1017_v18, %v1870_v12 }
 0x98b   :  { %v1018_v22 = vadd.f32 %v1016_v21, %v1866_v11 }
 0x98d   :  { %1331 = vmatprep.mubr.msk.f32.mxu0 %vm238_vm14, %v1018_v22 }
 0x98e   :  { %1332 = vmatmul.mubr.msk.f32.vlgmr.msra.gmra.mrb[6].mxu0 %vm238_vm14, %v1019_v23 }
 0xa61   :  { %v1333_v25 = vpop.f32.mrb[6].mxu0 }
 0xa62   :  { %v1104_v29 = vadd.f32 %v1333_v25, %v1141_v24  ;;  %v1098_v51 = vpop.f32.mrb[7].mxu0 }
 0xa63   :  { %v1099_v26 = vadd.f32 %v1141_v24, %v1098_v51 }
 0xa64   :  { %1108 = vst.msk [vmem:[#allocation2 + $0x8] sm:$0xff] %vm85_vm6, %v1104_v29 }
 0xa65   :  { %1107 = vst.msk [vmem:[#allocation2] sm:$0xff] %vm85_vm6, %v1099_v26 }
 0xa66   :  { %1454 = shalt.err (!%p1451_p4)
}
 0xa67   :  { %s1455_s13 = scalar_lea.hbm %s1973_s8, 256 }
 0xa68   :  { %p1456_p5 = scmp.ne.s32.totalorder %s1973_s8, %s1455_s13  ;;  %p1459_p6 = scmp.lt.u32.totalorder %s1455_s13, %s1973_s8 }
 0xa6a   :  { %p1461_p7 = pnand %p1459_p6, %p1456_p5 }
 0xa6c   :  { %1464 = shalt.err (!%p1461_p7)
}
 0xa6d   :  { %s1472_s16 = smov 128   ;;  %s1473_s17 = smov 8  }
 0xa6e   :  { %1120 = dma.vmem_to_hbm [thread:$0]  %s1115_s10, 256, %s1973_s8, [#allocation3], %s1472_s16, %s1472_s16, %s1473_s17  }
 0xa6f   :  { %1465 = dma.done.wait [#allocation3], 256  }
 0xa70   :  { %1466 = vsyncadd [#allocation3], 4294967040 }
 0xa71   :  { %1124 = vsyncpa [#allocation3], 1 }

</bundles_post_ra>
